<compile_context>
chip_gen: v5e
topology: v5e:2x2
jax: 0.10.0
libtpu: 0.0.40
codegen_flags: <defaults>
</compile_context>

<pallas_src>
import functools

import jax
import jax.numpy as jnp
from jax import lax
from jax.experimental import pallas as pl
from jax.experimental.pallas import tpu as pltpu

_LANE = 128      # vreg lane width
_SUBLANE = 8     # f32 sublane count


def _round_up(n, m):
    return ((n + m - 1) // m) * m


# ---------------------------------------------------------------------------
# Fused kernel
# ---------------------------------------------------------------------------
def _make_fused_mlp_kernel(num_layers, num_classes, out_dims, mask_classes):
    """Kernel computing the whole MLP for one batch tile.

    refs layout: (x_ref, w0, ..., w_{L-1}, bias_ref, o_ref)
      x_ref:   bf16 (tm, feat_pad)
      w_i:     bf16 (din_pad_i, dout_pad_i)
      bias:    f32  (num_layers, max_out_pad)
      o_ref:   f32  (tm, classes_pad)
    """

    def kernel(*refs):
        x_ref = refs[0]
        b_ref = refs[1 + num_layers]
        o_ref = refs[2 + num_layers]

        h = x_ref[...]                                     # bf16 (tm, F_pad)
        for li in range(num_layers):
            w_ref = refs[1 + li]
            dout = out_dims[li]
            # bf16 x bf16 -> f32 accumulate on the MXU.
            z = jnp.dot(h, w_ref[...], preferred_element_type=jnp.float32)
            z = z + b_ref[li:li + 1, :dout]                # f32 epilogue
            if li < num_layers - 1:
                # ReLU; cast to bf16 once here (halves live activation bytes).
                h = jnp.maximum(z, 0.0).astype(jnp.bfloat16)
                # Dropout == identity in eval mode.
            else:
                if mask_classes:
                    # Mask padded class lanes before the log-softmax reduce.
                    col = lax.broadcasted_iota(jnp.int32, z.shape, 1)
                    z = jnp.where(col < num_classes, z, -jnp.inf)
                m = jnp.max(z, axis=-1, keepdims=True)
                lse = m + jnp.log(
                    jnp.sum(jnp.exp(z - m), axis=-1, keepdims=True))
                o_ref[...] = (z - lse).astype(o_ref.dtype)

    return kernel


# ---------------------------------------------------------------------------
# Parameter init (matching nn.Linear default uniform init), pre-padded
# ---------------------------------------------------------------------------
def init_mlp_params(key, amount_of_features, amount_of_classes, hidden_size,
                    amount_layers):
    dims = [amount_of_features] + [hidden_size] * (amount_layers - 1) \
           + [amount_of_classes]
    weights = []
    raw_biases = []
    out_pads = []
    for i in range(amount_layers):
        fan_in, fan_out = dims[i], dims[i + 1]
        key, kw, kb = jax.random.split(key, 3)
        bound = 1.0 / float(fan_in) ** 0.5
        w = jax.random.uniform(kw, (fan_in, fan_out), jnp.float32,
                               minval=-bound, maxval=bound)
        b = jax.random.uniform(kb, (fan_out,), jnp.float32,
                               minval=-bound, maxval=bound)
        # Lane-dense zero padding: zero rows/cols contribute nothing to the
        # matmul, so the math is unchanged while every dim becomes a
        # multiple of 128.
        din_p = _round_up(fan_in, _LANE)
        dout_p = _round_up(fan_out, _LANE)
        w_p = jnp.pad(w, ((0, din_p - fan_in), (0, dout_p - fan_out)))
        weights.append(w_p.astype(jnp.bfloat16))            # bf16 weights
        raw_biases.append((b, fan_out))
        out_pads.append(dout_p)

    # Pack all biases into a single (num_layers, max_out_pad) f32 array.
    max_out = max(out_pads)
    biases = jnp.zeros((amount_layers, max_out), jnp.float32)
    for i, (b, fan_out) in enumerate(raw_biases):
        biases = biases.at[i, :fan_out].set(b)
    return weights, biases


# ---------------------------------------------------------------------------
# Forward pass (single fused pallas_call)
# ---------------------------------------------------------------------------
@functools.partial(jax.jit, static_argnames=("num_classes",))
def mlp_forward(x, weights, biases, *, num_classes):
    batch, feat = x.shape
    num_layers = len(weights)
    feat_pad = weights[0].shape[0]
    out_dims = tuple(w.shape[1] for w in weights)
    out_pad = out_dims[-1]
    max_out = biases.shape[1]

    # Batch tiling: single tile for small batches; 256-row tiles otherwise
    # (fills the 256-wide MXU on v6e/v7x and amortizes per-step overhead;
    # multiple grid steps also let v7x shard the "parallel" axis over 2 TCs).
    if batch <= 512:
        tm = _round_up(batch, _SUBLANE)
        batch_pad = tm
    else:
        tm = 256
        batch_pad = _round_up(batch, tm)

    # bf16 input activations: halves the x DMA bytes; MXU consumes bf16.
    x_pad = jnp.pad(x.astype(jnp.bfloat16),
                    ((0, batch_pad - batch), (0, feat_pad - feat)))

    # ---- VMEM budget bookkeeping (static, from shapes) -------------------
    weight_bytes = sum(w.shape[0] * w.shape[1] * 2 for w in weights) \
        + biases.shape[0] * biases.shape[1] * 4
    # Weights/bias have a constant index_map across the grid, so double
    # buffering them is pure waste; single-buffer when they are non-trivial.
    single_buffer_w = (2 * weight_bytes) > (8 << 20)
    w_bufs = 1 if single_buffer_w else 2
    w_kwargs = {"pipeline_mode": pl.Buffered(1)} if single_buffer_w else {}

    vmem_need = (2 * tm * feat_pad * 2            # x tile, double-buffered
                 + 2 * tm * out_pad * 4           # out tile, double-buffered
                 + w_bufs * weight_bytes          # resident weights + biases
                 + 4 * tm * max_out * 4)          # live intermediates (rough)

    cp_kwargs = {"dimension_semantics": ("parallel",)}
    if vmem_need > (32 << 20):
        # Cap at 64 MiB: safe on every generation (v7x physical VMEM).
        cp_kwargs["vmem_limit_bytes"] = int(min(vmem_need + (8 << 20),
                                                64 << 20))

    # ---- Specs ------------------------------------------------------------
    in_specs = [pl.BlockSpec((tm, feat_pad), lambda i: (i, 0))]
    for w in weights:
        din, dout = w.shape
        in_specs.append(pl.BlockSpec((din, dout), lambda i: (0, 0),
                                     **w_kwargs))
    in_specs.append(pl.BlockSpec((biases.shape[0], biases.shape[1]),
                                 lambda i: (0, 0), **w_kwargs))

    kernel = _make_fused_mlp_kernel(
        num_layers, num_classes, out_dims,
        mask_classes=(num_classes % _LANE != 0))

    out = pl.pallas_call(
        kernel,
        out_shape=jax.ShapeDtypeStruct((batch_pad, out_pad), jnp.float32),
        grid_spec=pltpu.PrefetchScalarGridSpec(
            num_scalar_prefetch=0,
            grid=(batch_pad // tm,),
            in_specs=in_specs,
            out_specs=pl.BlockSpec((tm, out_pad), lambda i: (i, 0)),
        ),
        compiler_params=pltpu.CompilerParams(**cp_kwargs),
    )(x_pad, *weights, biases)

    return out[:batch, :num_classes]


# ---------------------------------------------------------------------------
# Main
# ---------------------------------------------------------------------------
if __name__ == "__main__":
    amount_of_features = 32
    amount_of_classes = 16
    hidden_size = 64
    amount_layers = 3
    batch = 8

    key = jax.random.PRNGKey(0)
    key_x, key_p = jax.random.split(key)

    x = jax.random.normal(key_x, (batch, amount_of_features), jnp.float32)
    weights, biases = init_mlp_params(key_p, amount_of_features,
                                      amount_of_classes, hidden_size,
                                      amount_layers)

    out = mlp_forward(x, weights, biases, num_classes=amount_of_classes)
    out = jax.block_until_ready(out)

    # sanity: log-softmax rows should sum to ~1 after exp
    row_sums = jnp.sum(jnp.exp(out), axis=-1)
    assert out.shape == (batch, amount_of_classes)
    assert bool(jnp.all(jnp.abs(row_sums - 1.0) < 1e-4))
    assert bool(jnp.all(jnp.isfinite(out)))

    print("KERNEL_OK")
</pallas_src>

<mosaic_0001>
module attributes {stable_mosaic.version = 11 : i64} {
  func.func @kernel(%arg0: i32, %arg1: memref<8x128xbf16, #tpu.memory_space<vmem>>, %arg2: memref<128x128xbf16, #tpu.memory_space<vmem>>, %arg3: memref<128x128xbf16, #tpu.memory_space<vmem>>, %arg4: memref<128x128xbf16, #tpu.memory_space<vmem>>, %arg5: memref<3x128xf32, #tpu.memory_space<vmem>>, %arg6: memref<8x128xf32, #tpu.memory_space<vmem>>) attributes {dimension_semantics = [#tpu.dimension_semantics<parallel>], iteration_bounds = array<i64: 1>, scalar_prefetch = 0 : i64, scratch_operands = 0 : i64, tpu.core_type = #tpu.core_type<tc>, window_params = [{transform_indices = @transform_0, window_bounds = array<i64: 8, 128>}, {pipeline_mode = #tpu.pipeline_mode<synchronous>, transform_indices = @transform_1, window_bounds = array<i64: 128, 128>}, {pipeline_mode = #tpu.pipeline_mode<synchronous>, transform_indices = @transform_2, window_bounds = array<i64: 128, 128>}, {pipeline_mode = #tpu.pipeline_mode<synchronous>, transform_indices = @transform_3, window_bounds = array<i64: 128, 128>}, {pipeline_mode = #tpu.pipeline_mode<synchronous>, transform_indices = @transform_4, window_bounds = array<i64: 3, 128>}, {transform_indices = @transform_5, window_bounds = array<i64: 8, 128>}]} {
    %c0 = arith.constant 0 : index
    %c0_0 = arith.constant 0 : index
    %0 = vector.load %arg1[%c0, %c0_0] : memref<8x128xbf16, #tpu.memory_space<vmem>>, vector<8x128xbf16>
    %c0_1 = arith.constant 0 : index
    %c0_2 = arith.constant 0 : index
    %1 = vector.load %arg2[%c0_1, %c0_2] : memref<128x128xbf16, #tpu.memory_space<vmem>>, vector<128x128xbf16>
    %cst = arith.constant dense<0.000000e+00> : vector<8x128xf32>
    %2 = tpu.matmul %0, %1, %cst {dimension_numbers = #tpu.dot_dimension_numbers<[1], [0], [0], [1], [0, 0, 1, 1], [], []>} : vector<8x128xbf16>, vector<128x128xbf16>, vector<8x128xf32> -> vector<8x128xf32>
    %c0_3 = arith.constant 0 : index
    %c0_4 = arith.constant 0 : index
    %3 = vector.load %arg5[%c0_3, %c0_4] : memref<3x128xf32, #tpu.memory_space<vmem>>, vector<1x128xf32>
    %4 = vector.broadcast %3 : vector<1x128xf32> to vector<8x128xf32>
    %5 = arith.addf %2, %4 : vector<8x128xf32>
    %cst_5 = arith.constant 0.000000e+00 : f32
    %6 = vector.broadcast %cst_5 : f32 to vector<8x128xf32>
    %7 = arith.maximumf %5, %6 : vector<8x128xf32>
    %8 = arith.truncf %7 : vector<8x128xf32> to vector<8x128xbf16>
    %c0_6 = arith.constant 0 : index
    %c0_7 = arith.constant 0 : index
    %9 = vector.load %arg3[%c0_6, %c0_7] : memref<128x128xbf16, #tpu.memory_space<vmem>>, vector<128x128xbf16>
    %cst_8 = arith.constant dense<0.000000e+00> : vector<8x128xf32>
    %10 = tpu.matmul %8, %9, %cst_8 {dimension_numbers = #tpu.dot_dimension_numbers<[1], [0], [0], [1], [0, 0, 1, 1], [], []>} : vector<8x128xbf16>, vector<128x128xbf16>, vector<8x128xf32> -> vector<8x128xf32>
    %c1 = arith.constant 1 : index
    %c0_9 = arith.constant 0 : index
    %11 = vector.load %arg5[%c1, %c0_9] : memref<3x128xf32, #tpu.memory_space<vmem>>, vector<1x128xf32>
    %12 = vector.broadcast %11 : vector<1x128xf32> to vector<8x128xf32>
    %13 = arith.addf %10, %12 : vector<8x128xf32>
    %cst_10 = arith.constant 0.000000e+00 : f32
    %14 = vector.broadcast %cst_10 : f32 to vector<8x128xf32>
    %15 = arith.maximumf %13, %14 : vector<8x128xf32>
    %16 = arith.truncf %15 : vector<8x128xf32> to vector<8x128xbf16>
    %c0_11 = arith.constant 0 : index
    %c0_12 = arith.constant 0 : index
    %17 = vector.load %arg4[%c0_11, %c0_12] : memref<128x128xbf16, #tpu.memory_space<vmem>>, vector<128x128xbf16>
    %cst_13 = arith.constant dense<0.000000e+00> : vector<8x128xf32>
    %18 = tpu.matmul %16, %17, %cst_13 {dimension_numbers = #tpu.dot_dimension_numbers<[1], [0], [0], [1], [0, 0, 1, 1], [], []>} : vector<8x128xbf16>, vector<128x128xbf16>, vector<8x128xf32> -> vector<8x128xf32>
    %c2 = arith.constant 2 : index
    %c0_14 = arith.constant 0 : index
    %19 = vector.load %arg5[%c2, %c0_14] : memref<3x128xf32, #tpu.memory_space<vmem>>, vector<1x128xf32>
    %20 = vector.broadcast %19 : vector<1x128xf32> to vector<8x128xf32>
    %21 = arith.addf %18, %20 : vector<8x128xf32>
    %22 = tpu.iota {dimensions = array<i32: 1>} : vector<8x128xi32>
    %c16_i32 = arith.constant 16 : i32
    %23 = vector.broadcast %c16_i32 : i32 to vector<8x128xi32>
    %24 = arith.cmpi slt, %22, %23 : vector<8x128xi32>
    %cst_15 = arith.constant 0xFF800000 : f32
    %25 = vector.broadcast %cst_15 : f32 to vector<8x128xf32>
    %26 = arith.select %24, %21, %25 : vector<8x128xi1>, vector<8x128xf32>
    %cst_16 = arith.constant dense<0xFF800000> : vector<8xf32>
    %27 = vector.multi_reduction <maximumf>, %26, %cst_16 [1] : vector<8x128xf32> to vector<8xf32>
    %28 = vector.shape_cast %27 : vector<8xf32> to vector<8x1xf32>
    %29 = vector.broadcast %28 : vector<8x1xf32> to vector<8x128xf32>
    %30 = arith.subf %26, %29 : vector<8x128xf32>
    %31 = math.exp %30 : vector<8x128xf32>
    %cst_17 = arith.constant dense<0.000000e+00> : vector<8xf32>
    %32 = vector.multi_reduction <add>, %31, %cst_17 [1] : vector<8x128xf32> to vector<8xf32>
    %33 = vector.shape_cast %32 : vector<8xf32> to vector<8x1xf32>
    %34 = math.log %33 : vector<8x1xf32>
    %35 = arith.addf %28, %34 : vector<8x1xf32>
    %36 = vector.broadcast %35 : vector<8x1xf32> to vector<8x128xf32>
    %37 = arith.subf %26, %36 : vector<8x128xf32>
    %c0_18 = arith.constant 0 : index
    %c0_19 = arith.constant 0 : index
    %38 = vector.load %arg6[%c0_18, %c0_19] : memref<8x128xf32, #tpu.memory_space<vmem>>, vector<8x128xf32>
    tpu.vector_store %arg6[%c0_18, %c0_19], %37 {strides = array<i32>} : memref<8x128xf32, #tpu.memory_space<vmem>>, vector<8x128xf32>,
    return
  }
  func.func @transform_0(%arg0: i32) -> (i32, i32) {
    %c0_i32 = arith.constant 0 : i32
    %c0_i32_0 = arith.constant 0 : i32
    return %arg0, %c0_i32 : i32, i32
  }
  func.func @transform_1(%arg0: i32) -> (i32, i32) {
    %c0_i32 = arith.constant 0 : i32
    %c0_i32_0 = arith.constant 0 : i32
    %c0_i32_1 = arith.constant 0 : i32
    return %c0_i32, %c0_i32_0 : i32, i32
  }
  func.func @transform_2(%arg0: i32) -> (i32, i32) {
    %c0_i32 = arith.constant 0 : i32
    %c0_i32_0 = arith.constant 0 : i32
    %c0_i32_1 = arith.constant 0 : i32
    return %c0_i32, %c0_i32_0 : i32, i32
  }
  func.func @transform_3(%arg0: i32) -> (i32, i32) {
    %c0_i32 = arith.constant 0 : i32
    %c0_i32_0 = arith.constant 0 : i32
    %c0_i32_1 = arith.constant 0 : i32
    return %c0_i32, %c0_i32_0 : i32, i32
  }
  func.func @transform_4(%arg0: i32) -> (i32, i32) {
    %c0_i32 = arith.constant 0 : i32
    %c0_i32_0 = arith.constant 0 : i32
    %c0_i32_1 = arith.constant 0 : i32
    return %c0_i32, %c0_i32_0 : i32, i32
  }
  func.func @transform_5(%arg0: i32) -> (i32, i32) {
    %c0_i32 = arith.constant 0 : i32
    %c0_i32_0 = arith.constant 0 : i32
    return %arg0, %c0_i32 : i32, i32
  }
}

</mosaic_0001>

<bundles_post_ra>
// kernel: mlp_forward.1
= control target key start
LH: loop header
LB: loop body
LE: loop exit
PB: predicated region body
PF: predicated region fallthrough
CT: control target
= control target key end

     0   :  { %10 = vsyncpa [#allocation3], 0  ;;  %s639_s0 = inlined_call_operand.vmem [shape: bf16[8,128], index: 0, kind: input, shape index: {}]   ;;  %s640_s1 = inlined_call_operand.hbm [shape: bf16[128,128], index: 1, kind: input, shape index: {}]   ;;  %s641_s2 = inlined_call_operand.hbm [shape: bf16[128,128], index: 2, kind: input, shape index: {}]   ;;  %s642_s3 = inlined_call_operand.hbm [shape: bf16[128,128], index: 3, kind: input, shape index: {}]   ;;  %s643_s4 = inlined_call_operand.vmem [shape: f32[3,128], index: 4, kind: input, shape index: {}]   ;;  %s644_s5 = inlined_call_operand.hbm [shape: f32[8,128], index: 5, kind: output, shape index: {}]  }
   0x1   :  { %11 = vsyncpa [#allocation6], 0 }
   0x2   :  { %12 = vsyncpa [#allocation4], 0  ;;  %s32_s20 = sshll.u32 %s641_s2, 4  ;;  %s579_s21 = smov [#allocation5]   ;;  %s33_s20 = int_to_ptr.hbm [resolvable:$true] %s32_s20 }
   0x3   :  { %s34_s22 = sshll.u32 %s579_s21, 4  ;;  %s19_s25 = sshll.u32 %s640_s1, 4  ;;  %s35_s22 = int_to_ptr.vmem [resolvable:$true] %s34_s22  ;;  %s20_s25 = int_to_ptr.hbm [resolvable:$true] %s19_s25 }
   0x4   :  { %s580_s26 = smov 64   ;;  %s581_s27 = smov 4  }
   0x5   :  { %40 = dma.hbm_to_vmem [thread:$0]  %s33_s20, 1024, %s35_s22, [#allocation6], %s580_s26, %s580_s26, %s581_s27  }
   0x6   :  { %s582_s28 = smov [#allocation2]   ;;  %s45_s7 = sshll.u32 %s642_s3, 4  ;;  %s46_s7 = int_to_ptr.hbm [resolvable:$true] %s45_s7 }
   0x7   :  { %s21_s29 = sshll.u32 %s582_s28, 4  ;;  %s583_s2 = smov [#allocation7]   ;;  %s22_s29 = int_to_ptr.vmem [resolvable:$true] %s21_s29 }
   0x8   :  { %27 = dma.hbm_to_vmem [thread:$0]  %s20_s25, 1024, %s22_s29, [#allocation3], %s580_s26, %s580_s26, %s581_s27  }
   0x9   :  { %s47_s8 = sshll.u32 %s583_s2, 4  ;;  %s48_s8 = int_to_ptr.vmem [resolvable:$true] %s47_s8 }
   0xa   :  { %53 = dma.hbm_to_vmem [thread:$0]  %s46_s7, 1024, %s48_s8, [#allocation6], %s580_s26, %s580_s26, %s581_s27  }
   0xb   :  { %573 = dma.done.wait [#allocation3], 1024  }
   0xc   :  { %574 = vsyncadd [#allocation3], 4294966272 }
   0xd   :  { %575 = dma.done.wait [#allocation6], 2048  }
   0xe   :  { %576 = vsyncadd [#allocation6], 4294965248  ;;  %v447_v0 = vld [vmem:[#allocation2 + $0x38] sm:$0xff]  ;;  %v446_v1 = vld [vmem:[#allocation2 + $0x30] sm:$0xff]  ;;  %v310_v37 = vlaneseq  ;;  %s584_s14 = smov [#allocation8]   ;;  %s333_s17 = sshll.u32 %s644_s5, 4  ;;  %s334_s17 = int_to_ptr.hbm [resolvable:$true] %s333_s17 }
   0xf   :  { %135 = vmatpush.bf16.msra.mxu0 %v447_v0  ;;  %v455_v2 = vld [vmem:[#allocation5 + $0x38] sm:$0xff]  ;;  %v454_v3 = vld [vmem:[#allocation5 + $0x30] sm:$0xff]  ;;  %v445_v4 = vld [vmem:[#allocation2 + $0x28] sm:$0xff]  ;;  %s331_s15 = sshll.u32 %s584_s14, 4  ;;  %s332_s15 = int_to_ptr.vmem [resolvable:$true] %s331_s15 }
  0x10   :  { %216 = vmatpush.bf16.msra.mxu1 %v455_v2  ;;  %v453_v5 = vld [vmem:[#allocation5 + $0x28] sm:$0xff]  ;;  %v444_v6 = vld [vmem:[#allocation2 + $0x20] sm:$0xff]  ;;  %v443_v8 = vld [vmem:[#allocation2 + $0x18] sm:$0xff]  ;;  %v311_v38 = vand.u32 127, %v310_v37 }
  0x11   :  { %v452_v7 = vld [vmem:[#allocation5 + $0x20] sm:$0xff]  ;;  %v451_v9 = vld [vmem:[#allocation5 + $0x18] sm:$0xff]  ;;  %v442_v10 = vld [vmem:[#allocation2 + $0x10] sm:$0xff] }
  0x12   :  { %v450_v11 = vld [vmem:[#allocation5 + $0x10] sm:$0xff]  ;;  %v441_v12 = vld [vmem:[#allocation2 + $0x8] sm:$0xff]  ;;  %v440_v13 = vld [vmem:[#allocation2] sm:$0xff]  ;;  %vm312_vm0 = vcmp.lt.s32.totalorder %v311_v38, 16 }
  0x13   :  { %136 = vmatpush.bf16.msra.mxu0 %v446_v1  ;;  %v68_v14 = vld [vmem:[%s639_s0] sm:$0xf]  ;;  %v449_v15 = vld [vmem:[#allocation5 + $0x8] sm:$0xff]  ;;  %v463_v17 = vld [vmem:[#allocation7 + $0x38] sm:$0xff] }
  0x14   :  { %217 = vmatpush.bf16.msra.mxu1 %v454_v3  ;;  %v448_v16 = vld [vmem:[#allocation5] sm:$0xff]  ;;  %297 = vmatpush.bf16.msra.mxu2 %v463_v17  ;;  %v462_v18 = vld [vmem:[#allocation7 + $0x30] sm:$0xff]  ;;  %v461_v19 = vld [vmem:[#allocation7 + $0x28] sm:$0xff] }
  0x15   :  { %v460_v20 = vld [vmem:[#allocation7 + $0x20] sm:$0xff]  ;;  %v459_v21 = vld [vmem:[#allocation7 + $0x18] sm:$0xff]  ;;  %v458_v22 = vld [vmem:[#allocation7 + $0x10] sm:$0xff] }
  0x16   :  { %v470_v23 = vld [vmem:[%s643_s4] ss:$0 sm:$0xff]  ;;  %v457_v29 = vld [vmem:[#allocation7 + $0x8] sm:$0xff]  ;;  %v471_v31 = vld [vmem:[%s643_s4 + $0x1] ss:$0 sm:$0xff] }
  0x17   :  { %137 = vmatpush.bf16.msra.mxu0 %v445_v4  ;;  %v456_v30 = vld [vmem:[#allocation7] sm:$0xff] }
  0x18   :  { %218 = vmatpush.bf16.msra.mxu1 %v453_v5  ;;  %298 = vmatpush.bf16.msra.mxu2 %v462_v18  ;;  %v472_v39 = vld [vmem:[%s643_s4 + $0x2] ss:$0 sm:$0xff] }
  0x1b   :  { %138 = vmatpush.bf16.msra.mxu0 %v444_v6 }
  0x1c   :  { %219 = vmatpush.bf16.msra.mxu1 %v452_v7  ;;  %299 = vmatpush.bf16.msra.mxu2 %v461_v19 }
  0x1f   :  { %139 = vmatpush.bf16.msra.mxu0 %v443_v8 }
  0x20   :  { %220 = vmatpush.bf16.msra.mxu1 %v451_v9  ;;  %300 = vmatpush.bf16.msra.mxu2 %v460_v20 }
  0x23   :  { %140 = vmatpush.bf16.msra.mxu0 %v442_v10 }
  0x24   :  { %221 = vmatpush.bf16.msra.mxu1 %v450_v11  ;;  %301 = vmatpush.bf16.msra.mxu2 %v459_v21 }
  0x27   :  { %141 = vmatpush.bf16.msra.mxu0 %v441_v12 }
  0x28   :  { %222 = vmatpush.bf16.msra.mxu1 %v449_v15  ;;  %302 = vmatpush.bf16.msra.mxu2 %v458_v22 }
  0x2b   :  { %142 = vmatpush.bf16.msra.mxu0 %v440_v13 }
  0x2c   :  { %223 = vmatpush.bf16.msra.mxu1 %v448_v16  ;;  %303 = vmatpush.bf16.msra.mxu2 %v457_v29 }
  0x2e   :  { %143 = vmatmul.bf16.vlgmr.msra.gmra.mxu0 %v68_v14 }
  0x30   :  { %304 = vmatpush.bf16.msra.mxu2 %v456_v30 }
  0xab   :  { %v144_v24 = vpop.f32.mrf.mxu0 }
  0xac   :  { %v145_v25 = vadd.f32 %v470_v23, %v144_v24 }
  0xae   :  { %v148_v26 = vmax.f32 %v145_v25, 0.0 }
  0xb0   :  { %v149_v27 = vpack.c.bf16 %v148_v26, %v148_v26 }
  0xb2   :  { %224 = vmatmul.bf16.vlgmr.msra.gmra.mxu1 %v149_v27 }
  0xb3   :  { %v146_v28 = vpop.f32.mrf.mxu0 }
 0x12f   :  { %v225_v32 = vpop.f32.mrf.mxu1 }
 0x130   :  { %v226_v33 = vadd.f32 %v471_v31, %v225_v32 }
 0x132   :  { %v229_v34 = vmax.f32 %v226_v33, 0.0 }
 0x134   :  { %v230_v35 = vpack.c.bf16 %v229_v34, %v229_v34 }
 0x136   :  { %305 = vmatmul.bf16.vlgmr.msra.gmra.mxu2 %v230_v35 }
 0x137   :  { %v227_v36 = vpop.f32.mrf.mxu1 }
 0x1b9   :  { %v306_v40 = vpop.f32.mrf.mxu2 }
 0x1ba   :  { %v307_v41 = vadd.f32 %v472_v39, %v306_v40 }
 0x1bc   :  { %v313_v42 = vsel %vm312_vm0, %v307_v41, -inf }
 0x1bd   :  { %314 = vmax.xlane.f32.xlu0 %v313_v42 }
 0x1c1   :  { %v308_v43 = vpop.f32.mrf.mxu2 }
 0x230   :  { %v315_v44 = vpop.xlane.xlu0 %314 }
 0x231   :  { %v316_v45 = vsub.f32 %v313_v42, %v315_v44 }
 0x233   :  { %v317_v46 = vmul.f32 1.442695, %v316_v45 }
 0x235   :  { %473 = vpow2.f32 %v317_v46 }
 0x23b   :  { %v474_v47 = vpop.eup %473 }
 0x23c   :  { %319 = vadd.xlane.f32.xlu0 %v474_v47 }
 0x2af   :  { %v320_v48 = vpop.xlane.xlu0 %319 }
 0x2b0   :  { %475 = vlog2.f32 %v320_v48 }
 0x2b6   :  { %v476_v49 = vpop.eup %475 }
 0x2b7   :  { %v322_v50 = vmul.f32 0.6931472, %v476_v49 }
 0x2b9   :  { %v323_v51 = vadd.f32 %v322_v50, %v315_v44 }
 0x2bb   :  { %v324_v52 = vsub.f32 %v313_v42, %v323_v51 }
 0x2bd   :  { %325 = vst [vmem:[#allocation8] sm:$0xff] %v324_v52 }
 0x2be   :  { %336 = dma.vmem_to_hbm [thread:$0]  %s332_s15, 128, %s334_s17, [#allocation4]  }
 0x2bf   :  { %577 = dma.done.wait [#allocation4], 128  }
 0x2c0   :  { %578 = vsyncadd [#allocation4], 4294967168 }
 0x2c1   :  { %341 = vsyncpa [#allocation3], 1 }
 0x2c2   :  { %342 = vsyncpa [#allocation6], 1 }
 0x2c3   :  { %343 = vsyncpa [#allocation4], 1 }

</bundles_post_ra>
